<compile_context>
chip_gen: v7x
topology: tpu7x:2x2x1
jax: 0.10.0
libtpu: 0.0.40
codegen_flags: <defaults>
</compile_context>

<pallas_src>
import functools
import math

import jax
import jax.numpy as jnp
from jax.experimental import pallas as pl
from jax.experimental.pallas import tpu as pltpu


def _row_sum_lane_replicated(x2d):
    """(R, Dp) -> (R, Dp) f32 with the row-sum of x2d replicated in every lane.

    x2d @ ones((Dp, Dp)) does the lane-axis reduction AND the lane broadcast in
    one MXU op (no XLU reduce, no relayout).  f32 operands are split into hi/lo
    bf16 halves (two native bf16 matmuls, f32 accumulation) so the result is
    f32-accurate independent of the default f32 MXU precision.
    """
    dp = x2d.shape[-1]
    if x2d.dtype == jnp.float32:
        ones = jnp.ones((dp, dp), jnp.bfloat16)
        hi = x2d.astype(jnp.bfloat16)
        lo = (x2d - hi.astype(jnp.float32)).astype(jnp.bfloat16)
        return (jnp.dot(hi, ones, preferred_element_type=jnp.float32)
                + jnp.dot(lo, ones, preferred_element_type=jnp.float32))
    ones = jnp.ones((dp, dp), x2d.dtype)
    return jnp.dot(x2d, ones, preferred_element_type=jnp.float32)


def _sdp_attention_kernel(q_ref, k_ref, v_ref, o_ref, m_sc, l_sc, acc_sc, *,
                          inv_scale, approx_reciprocal):
    """One (B-tile, S-tile) grid step of online-softmax scaled dot-product attention.

    q_ref:  (tb, Dp)      query tile (constant across the S axis)
    k_ref:  (ts, tb, Dp)  keys tile
    v_ref:  (ts, tb, Dp)  values tile
    o_ref:  (tb, Dp)      output tile (written on the last S step only)
    m_sc:   (tb, Dp)      running max of scores, lane-replicated   (f32 scratch)
    l_sc:   (tb, Dp)      running softmax denom, lane-replicated   (f32 scratch)
    acc_sc: (tb, Dp)      running exp-weighted value accumulator   (f32 scratch)
    """
    si = pl.program_id(1)

    @pl.when(si == 0)
    def _init():
        m_sc[...] = jnp.full(m_sc.shape, -jnp.inf, jnp.float32)
        l_sc[...] = jnp.zeros(l_sc.shape, jnp.float32)
        acc_sc[...] = jnp.zeros(acc_sc.shape, jnp.float32)

    q = q_ref[...]                       # (tb, Dp)     native dtype
    k = k_ref[...]                       # (ts, tb, Dp) native dtype
    v = v_ref[...]                       # (ts, tb, Dp) native dtype
    ts, tb, dp = k.shape

    # Scores.  q*k is a cheap VPU multiply in the native dtype (bf16 stays bf16
    # on v6e/v7x); the D-contraction + lane-broadcast run on the MXU, so the
    # result is already in V's (sublane=b, lane=d) layout.
    # TODO(synk): once batched lax.dot_general is confirmed to lower efficiently
    # for the (S, B, D) operand layout (batch dim = b at operand position 1),
    # replace the ones-matmul and the p*V VPU accumulate below with two batched
    # MXU dots and drop the (ts, tb, Dp)-sized qk / p intermediates entirely.
    qk = (q[None, :, :] * k).reshape(ts * tb, dp)
    s = _row_sum_lane_replicated(qk).reshape(ts, tb, dp) * inv_scale   # f32

    # Online softmax over the S axis (PyTorch softmax dim=0).  All running
    # stats are lane-replicated (tb, Dp) f32 matching the accumulator layout,
    # so no relayouts; the S-axis reductions are over the leading (non-tiled)
    # dim, i.e. plain VPU max/adds.
    m_prev = m_sc[...]                                   # (tb, Dp)
    m_new = jnp.maximum(m_prev, jnp.max(s, axis=0))      # (tb, Dp)
    alpha = jnp.exp(m_prev - m_new)                      # (tb, Dp)
    p = jnp.exp(s - m_new)                               # (ts, tb, Dp), lane-replicated

    l_sc[...] = alpha * l_sc[...] + jnp.sum(p, axis=0)
    m_sc[...] = m_new

    # Weighted values: p already has V's layout, so this is a VPU multiply plus
    # an accumulate over the leading S dim (no XLU, no transpose).  p is f32;
    # V promotes to f32 so the accumulation stays f32.
    acc_sc[...] = alpha * acc_sc[...] + jnp.sum(p * v, axis=0)

    @pl.when(si == pl.num_programs(1) - 1)
    def _finalize():
        if approx_reciprocal:
            # EUP reciprocal (separate VLIW slot); ~1e-4-level relative error,
            # well inside the test tolerance.  Set approx_reciprocal=False for
            # an exact divide.
            out = acc_sc[...] * pl.reciprocal(l_sc[...], approx=True)
        else:
            out = acc_sc[...] / l_sc[...]
        o_ref[...] = out.astype(o_ref.dtype)


def _pick_tile(dim, cap, align):
    """Largest divisor of `dim` that is <= cap, preferring multiples of `align`."""
    cap = max(1, min(cap, dim))
    best = None
    for t in range(cap, 0, -1):
        if dim % t == 0:
            if t % align == 0:
                return t
            if best is None:
                best = t
    return best if best is not None else dim


def sdp_attention(query, keys, values, *, block_b=None, block_s=None,
                  kv_buffer_count=None, approx_reciprocal=True):
    """query: (B, D); keys, values: (S, B, D).
    Returns softmax_S((q*k).sum(-1)/sqrt(D)) weighted-summed values, shape (B, D)."""
    S, B, D = keys.shape
    assert query.shape == (B, D), (query.shape, keys.shape)
    assert values.shape == (S, B, D), (values.shape, keys.shape)
    inv_scale = 1.0 / math.sqrt(D)                # n_in == (unpadded) D

    itemsize = jnp.dtype(keys.dtype).itemsize

    # Lane/sublane density (review): D maps to lanes, B to sublanes.  Zero-pad
    # to hardware-dense sizes; padding is exact (padded d-lanes contribute 0 to
    # the dot product and produce 0 output lanes; padded b-rows are sliced off)
    # and keeps every DMA / vreg / output store dense.
    # TODO(synk): production callers should fold heads/timesteps so D and B are
    # already dense and this one extra HBM pad copy is avoided.
    lane = 128
    sub = max(8, 32 // itemsize)                  # 8 (f32), 16 (bf16), 32 (int8)
    Dp = -(-D // lane) * lane
    Bp = -(-B // sub) * sub
    if (Dp, Bp) != (D, B):
        query = jnp.pad(query, ((0, Bp - B), (0, Dp - D)))
        keys = jnp.pad(keys, ((0, 0), (0, Bp - B), (0, Dp - D)))
        values = jnp.pad(values, ((0, 0), (0, Bp - B), (0, Dp - D)))

    # Generation-aware VMEM budgets: ~3/8 of physical VMEM for the per-step
    # working set and ~5/8 for the scoped limit -> 48 / 80 MiB on v5e & v6e
    # (128 MiB VMEM), 24 / 40 MiB on v7x (64 MiB VMEM).
    try:
        vmem_cap = int(pltpu.get_tpu_info().vmem_capacity_bytes)
    except Exception:
        vmem_cap = 64 * 1024 * 1024               # conservative (v7x-sized) fallback
    work_budget = min(max(vmem_cap * 3 // 8, 8 << 20), 48 << 20)
    vmem_limit = min(max(vmem_cap * 5 // 8, 32 << 20), 100 << 20)

    # --- B tile: second-minor dim of every block -> multiple of `sub`.  Keep at
    # least 2 tiles when B allows it so the "parallel" axis can be sharded
    # across both v7x TensorCores (harmless on single-core chips).
    if block_b is None:
        tb_cap = Bp if Bp < 2 * sub else min(128, Bp // 2)
        tb = _pick_tile(Bp, tb_cap, sub)
    else:
        tb = block_b
    assert Bp % tb == 0 and tb % sub == 0, (Bp, tb, sub)
    # TODO(synk): when B yields a single tile on v7x, split the S axis across
    # the two TensorCores instead (two partial online-softmax states + combine).

    # --- S tile: sized so double-buffered K+V plus the per-step f32
    # intermediates (qk, hi/lo split, scores, p, p*v) stay within the budget.
    if block_s is None:
        bytes_per_s_row = tb * Dp * (2 * 2 * itemsize + 24)
        ts = _pick_tile(S, max(1, work_budget // bytes_per_s_row), 8)
    else:
        ts = block_s
    assert S % ts == 0, (S, ts)

    grid = (Bp // tb, S // ts)
    kernel = functools.partial(_sdp_attention_kernel, inv_scale=inv_scale,
                               approx_reciprocal=approx_reciprocal)

    def kv_spec():
        # kv_buffer_count=3 is worth sweeping on v7x (short per-tile DMAs at
        # ~3.2 TB/s per TC), VMEM permitting; default is double-buffering.
        # TODO(synk): on v7x, carrying K/V in fp8 (f32 softmax math) would
        # roughly halve HBM bytes for this memory-bound kernel.
        if kv_buffer_count is not None and kv_buffer_count != 2:
            return pl.BlockSpec((ts, tb, Dp), lambda bi, si: (si, bi, 0),
                                pipeline_mode=pl.Buffered(kv_buffer_count))
        return pl.BlockSpec((ts, tb, Dp), lambda bi, si: (si, bi, 0))

    out = pl.pallas_call(
        kernel,
        out_shape=jax.ShapeDtypeStruct((Bp, Dp), query.dtype),
        grid_spec=pltpu.PrefetchScalarGridSpec(
            num_scalar_prefetch=0,
            grid=grid,
            in_specs=[
                pl.BlockSpec((tb, Dp), lambda bi, si: (bi, 0)),   # query
                kv_spec(),                                        # keys
                kv_spec(),                                        # values
            ],
            out_specs=pl.BlockSpec((tb, Dp), lambda bi, si: (bi, 0)),
            scratch_shapes=[
                pltpu.VMEM((tb, Dp), jnp.float32),   # running max m   (lane-replicated)
                pltpu.VMEM((tb, Dp), jnp.float32),   # running denom l (lane-replicated)
                pltpu.VMEM((tb, Dp), jnp.float32),   # running weighted-value accumulator
            ],
        ),
        compiler_params=pltpu.CompilerParams(
            # B tiles are independent -> megacore-shardable; the S (softmax
            # reduction) axis is the trailing "arbitrary" axis.
            dimension_semantics=("parallel", "arbitrary"),
            vmem_limit_bytes=int(vmem_limit),
        ),
    )(query, keys, values)

    if (Dp, Bp) != (D, B):
        out = out[:B, :D]
    return out


def _reference(query, keys, values):
    scale = math.sqrt(keys.shape[-1])
    q32 = query.astype(jnp.float32)
    k32 = keys.astype(jnp.float32)
    v32 = values.astype(jnp.float32)
    dot = jnp.sum(q32[None] * k32, axis=-1) / scale           # (S, B)
    w = jax.nn.softmax(dot, axis=0)[..., None]                # (S, B, 1)
    return jnp.sum(w * v32, axis=0)                           # (B, D)


if __name__ == "__main__":
    key = jax.random.PRNGKey(0)
    kq, kk, kv = jax.random.split(key, 3)

    # Shapes implied by the module: seq=8, batch=2, n_in=32.  Exercises the
    # lane/sublane padding path (B 2->8, D 32->128).
    S, B, D = 8, 2, 32
    query = jax.random.normal(kq, (B, D), dtype=jnp.float32)
    keys = jax.random.normal(kk, (S, B, D), dtype=jnp.float32)
    values = jax.random.normal(kv, (S, B, D), dtype=jnp.float32)

    out = jax.block_until_ready(sdp_attention(query, keys, values))
    ref = _reference(query, keys, values)
    assert out.shape == (B, D)
    assert jnp.allclose(out, ref.astype(out.dtype), atol=5e-3, rtol=5e-3), \
        "mismatch vs reference (small shapes)"

    # Tiled, lane-dense path: 2 B tiles (parallel axis), 4 S tiles
    # (online-softmax accumulation across "arbitrary" grid steps), D=128.
    S2, B2, D2 = 64, 16, 128
    kq2, kk2, kv2 = jax.random.split(jax.random.PRNGKey(1), 3)
    query2 = jax.random.normal(kq2, (B2, D2), dtype=jnp.float32)
    keys2 = jax.random.normal(kk2, (S2, B2, D2), dtype=jnp.float32)
    values2 = jax.random.normal(kv2, (S2, B2, D2), dtype=jnp.float32)

    out2 = jax.block_until_ready(
        sdp_attention(query2, keys2, values2, block_b=8, block_s=16))
    ref2 = _reference(query2, keys2, values2)
    assert out2.shape == (B2, D2)
    assert jnp.allclose(out2, ref2.astype(out2.dtype), atol=5e-3, rtol=5e-3), \
        "mismatch vs reference (tiled path)"

    print("KERNEL_OK")
</pallas_src>

<mosaic_0001>
module attributes {stable_mosaic.version = 11 : i64} {
  func.func @_sdp_attention_kernel(%arg0: i32, %arg1: i32, %arg2: memref<8x128xf32, #tpu.memory_space<vmem>>, %arg3: memref<8x8x128xf32, #tpu.memory_space<vmem>>, %arg4: memref<8x8x128xf32, #tpu.memory_space<vmem>>, %arg5: memref<8x128xf32, #tpu.memory_space<vmem>>, %arg6: memref<8x128xf32, #tpu.memory_space<vmem>>, %arg7: memref<8x128xf32, #tpu.memory_space<vmem>>, %arg8: memref<8x128xf32, #tpu.memory_space<vmem>>) attributes {dimension_semantics = [#tpu.dimension_semantics<parallel>, #tpu.dimension_semantics<arbitrary>], iteration_bounds = array<i64: 1, 1>, scalar_prefetch = 0 : i64, scratch_operands = 3 : i64, tpu.core_type = #tpu.core_type<tc>, window_params = [{transform_indices = @transform_0, window_bounds = array<i64: 8, 128>}, {transform_indices = @transform_1, window_bounds = array<i64: 8, 8, 128>}, {transform_indices = @transform_2, window_bounds = array<i64: 8, 8, 128>}, {transform_indices = @transform_3, window_bounds = array<i64: 8, 128>}]} {
    %c0_i32 = arith.constant 0 : i32
    %0 = arith.cmpi eq, %arg1, %c0_i32 : i32
    %1 = arith.extui %0 : i1 to i32
    %c0_i32_0 = arith.constant 0 : i32
    %2 = arith.cmpi ne, %1, %c0_i32_0 : i32
    scf.if %2 {
      %cst_28 = arith.constant 0xFF800000 : f32
      %45 = vector.broadcast %cst_28 : f32 to vector<8x128xf32>
      %c0_29 = arith.constant 0 : index
      %c0_30 = arith.constant 0 : index
      %46 = vector.load %arg6[%c0_29, %c0_30] : memref<8x128xf32, #tpu.memory_space<vmem>>, vector<8x128xf32>
      tpu.vector_store %arg6[%c0_29, %c0_30], %45 {strides = array<i32>} : memref<8x128xf32, #tpu.memory_space<vmem>>, vector<8x128xf32>,
      %cst_31 = arith.constant 0.000000e+00 : f32
      %47 = vector.broadcast %cst_31 : f32 to vector<8x128xf32>
      %c0_32 = arith.constant 0 : index
      %c0_33 = arith.constant 0 : index
      %48 = vector.load %arg7[%c0_32, %c0_33] : memref<8x128xf32, #tpu.memory_space<vmem>>, vector<8x128xf32>
      tpu.vector_store %arg7[%c0_32, %c0_33], %47 {strides = array<i32>} : memref<8x128xf32, #tpu.memory_space<vmem>>, vector<8x128xf32>,
      %cst_34 = arith.constant 0.000000e+00 : f32
      %49 = vector.broadcast %cst_34 : f32 to vector<8x128xf32>
      %c0_35 = arith.constant 0 : index
      %c0_36 = arith.constant 0 : index
      %50 = vector.load %arg8[%c0_35, %c0_36] : memref<8x128xf32, #tpu.memory_space<vmem>>, vector<8x128xf32>
      tpu.vector_store %arg8[%c0_35, %c0_36], %49 {strides = array<i32>} : memref<8x128xf32, #tpu.memory_space<vmem>>, vector<8x128xf32>,
    } else {
    }
    %c0 = arith.constant 0 : index
    %c0_1 = arith.constant 0 : index
    %3 = vector.load %arg2[%c0, %c0_1] : memref<8x128xf32, #tpu.memory_space<vmem>>, vector<8x128xf32>
    %c0_2 = arith.constant 0 : index
    %c0_3 = arith.constant 0 : index
    %c0_4 = arith.constant 0 : index
    %4 = vector.load %arg3[%c0_2, %c0_3, %c0_4] : memref<8x8x128xf32, #tpu.memory_space<vmem>>, vector<8x8x128xf32>
    %c0_5 = arith.constant 0 : index
    %c0_6 = arith.constant 0 : index
    %c0_7 = arith.constant 0 : index
    %5 = vector.load %arg4[%c0_5, %c0_6, %c0_7] : memref<8x8x128xf32, #tpu.memory_space<vmem>>, vector<8x8x128xf32>
    %6 = vector.shape_cast %3 : vector<8x128xf32> to vector<1x8x128xf32>
    %7 = vector.broadcast %6 : vector<1x8x128xf32> to vector<8x8x128xf32>
    %8 = arith.mulf %7, %4 : vector<8x8x128xf32>
    %9 = vector.shape_cast %8 : vector<8x8x128xf32> to vector<64x128xf32>
    %cst = arith.constant 1.000000e+00 : bf16
    %10 = vector.broadcast %cst : bf16 to vector<128x128xbf16>
    %11 = arith.truncf %9 : vector<64x128xf32> to vector<64x128xbf16>
    %12 = arith.extf %11 : vector<64x128xbf16> to vector<64x128xf32>
    %13 = arith.subf %9, %12 : vector<64x128xf32>
    %14 = arith.truncf %13 : vector<64x128xf32> to vector<64x128xbf16>
    %cst_8 = arith.constant dense<0.000000e+00> : vector<64x128xf32>
    %15 = tpu.matmul %11, %10, %cst_8 {dimension_numbers = #tpu.dot_dimension_numbers<[1], [0], [0], [1], [0, 0, 1, 1], [], []>} : vector<64x128xbf16>, vector<128x128xbf16>, vector<64x128xf32> -> vector<64x128xf32>
    %cst_9 = arith.constant dense<0.000000e+00> : vector<64x128xf32>
    %16 = tpu.matmul %14, %10, %cst_9 {dimension_numbers = #tpu.dot_dimension_numbers<[1], [0], [0], [1], [0, 0, 1, 1], [], []>} : vector<64x128xbf16>, vector<128x128xbf16>, vector<64x128xf32> -> vector<64x128xf32>
    %17 = arith.addf %15, %16 : vector<64x128xf32>
    %18 = vector.shape_cast %17 : vector<64x128xf32> to vector<8x8x128xf32>
    %cst_10 = arith.constant 0.176776692 : f32
    %19 = vector.broadcast %cst_10 : f32 to vector<8x8x128xf32>
    %20 = arith.mulf %18, %19 : vector<8x8x128xf32>
    %c0_11 = arith.constant 0 : index
    %c0_12 = arith.constant 0 : index
    %21 = vector.load %arg6[%c0_11, %c0_12] : memref<8x128xf32, #tpu.memory_space<vmem>>, vector<8x128xf32>
    %cst_13 = arith.constant dense<0xFF800000> : vector<8x128xf32>
    %22 = vector.multi_reduction <maximumf>, %20, %cst_13 [0] : vector<8x8x128xf32> to vector<8x128xf32>
    %23 = arith.maximumf %21, %22 : vector<8x128xf32>
    %24 = arith.subf %21, %23 : vector<8x128xf32>
    %25 = math.exp %24 : vector<8x128xf32>
    %26 = vector.shape_cast %23 : vector<8x128xf32> to vector<1x8x128xf32>
    %27 = vector.broadcast %26 : vector<1x8x128xf32> to vector<8x8x128xf32>
    %28 = arith.subf %20, %27 : vector<8x8x128xf32>
    %29 = math.exp %28 : vector<8x8x128xf32>
    %c0_14 = arith.constant 0 : index
    %c0_15 = arith.constant 0 : index
    %30 = vector.load %arg7[%c0_14, %c0_15] : memref<8x128xf32, #tpu.memory_space<vmem>>, vector<8x128xf32>
    %31 = arith.mulf %25, %30 : vector<8x128xf32>
    %cst_16 = arith.constant dense<0.000000e+00> : vector<8x128xf32>
    %32 = vector.multi_reduction <add>, %29, %cst_16 [0] : vector<8x8x128xf32> to vector<8x128xf32>
    %33 = arith.addf %31, %32 : vector<8x128xf32>
    %c0_17 = arith.constant 0 : index
    %c0_18 = arith.constant 0 : index
    %34 = vector.load %arg7[%c0_17, %c0_18] : memref<8x128xf32, #tpu.memory_space<vmem>>, vector<8x128xf32>
    tpu.vector_store %arg7[%c0_17, %c0_18], %33 {strides = array<i32>} : memref<8x128xf32, #tpu.memory_space<vmem>>, vector<8x128xf32>,
    %c0_19 = arith.constant 0 : index
    %c0_20 = arith.constant 0 : index
    %35 = vector.load %arg6[%c0_19, %c0_20] : memref<8x128xf32, #tpu.memory_space<vmem>>, vector<8x128xf32>
    tpu.vector_store %arg6[%c0_19, %c0_20], %23 {strides = array<i32>} : memref<8x128xf32, #tpu.memory_space<vmem>>, vector<8x128xf32>,
    %c0_21 = arith.constant 0 : index
    %c0_22 = arith.constant 0 : index
    %36 = vector.load %arg8[%c0_21, %c0_22] : memref<8x128xf32, #tpu.memory_space<vmem>>, vector<8x128xf32>
    %37 = arith.mulf %25, %36 : vector<8x128xf32>
    %38 = arith.mulf %29, %5 : vector<8x8x128xf32>
    %cst_23 = arith.constant dense<0.000000e+00> : vector<8x128xf32>
    %39 = vector.multi_reduction <add>, %38, %cst_23 [0] : vector<8x8x128xf32> to vector<8x128xf32>
    %40 = arith.addf %37, %39 : vector<8x128xf32>
    %c0_24 = arith.constant 0 : index
    %c0_25 = arith.constant 0 : index
    %41 = vector.load %arg8[%c0_24, %c0_25] : memref<8x128xf32, #tpu.memory_space<vmem>>, vector<8x128xf32>
    tpu.vector_store %arg8[%c0_24, %c0_25], %40 {strides = array<i32>} : memref<8x128xf32, #tpu.memory_space<vmem>>, vector<8x128xf32>,
    %c0_i32_26 = arith.constant 0 : i32
    %42 = arith.cmpi eq, %arg1, %c0_i32_26 : i32
    %43 = arith.extui %42 : i1 to i32
    %c0_i32_27 = arith.constant 0 : i32
    %44 = arith.cmpi ne, %43, %c0_i32_27 : i32
    scf.if %44 {
      %c0_28 = arith.constant 0 : index
      %c0_29 = arith.constant 0 : index
      %45 = vector.load %arg8[%c0_28, %c0_29] : memref<8x128xf32, #tpu.memory_space<vmem>>, vector<8x128xf32>
      %c0_30 = arith.constant 0 : index
      %c0_31 = arith.constant 0 : index
      %46 = vector.load %arg7[%c0_30, %c0_31] : memref<8x128xf32, #tpu.memory_space<vmem>>, vector<8x128xf32>
      %47 = tpu.reciprocal %46 {approx = true} : vector<8x128xf32> -> vector<8x128xf32>
      %48 = arith.mulf %45, %47 : vector<8x128xf32>
      %c0_32 = arith.constant 0 : index
      %c0_33 = arith.constant 0 : index
      %49 = vector.load %arg5[%c0_32, %c0_33] : memref<8x128xf32, #tpu.memory_space<vmem>>, vector<8x128xf32>
      tpu.vector_store %arg5[%c0_32, %c0_33], %48 {strides = array<i32>} : memref<8x128xf32, #tpu.memory_space<vmem>>, vector<8x128xf32>,
    } else {
    }
    return
  }
  func.func @transform_0(%arg0: i32, %arg1: i32) -> (i32, i32) {
    %c0_i32 = arith.constant 0 : i32
    %c0_i32_0 = arith.constant 0 : i32
    return %arg0, %c0_i32 : i32, i32
  }
  func.func @transform_1(%arg0: i32, %arg1: i32) -> (i32, i32, i32) {
    %c0_i32 = arith.constant 0 : i32
    %c0_i32_0 = arith.constant 0 : i32
    return %arg1, %arg0, %c0_i32 : i32, i32, i32
  }
  func.func @transform_2(%arg0: i32, %arg1: i32) -> (i32, i32, i32) {
    %c0_i32 = arith.constant 0 : i32
    %c0_i32_0 = arith.constant 0 : i32
    return %arg1, %arg0, %c0_i32 : i32, i32, i32
  }
  func.func @transform_3(%arg0: i32, %arg1: i32) -> (i32, i32) {
    %c0_i32 = arith.constant 0 : i32
    %c0_i32_0 = arith.constant 0 : i32
    return %arg0, %c0_i32 : i32, i32
  }
}

</mosaic_0001>

<bundles_post_ra>
// kernel: tpu_custom_call.1
= control target key start
LH: loop header
LB: loop body
LE: loop exit
PB: predicated region body
PF: predicated region fallthrough
CT: control target
= control target key end

     0   :  { %8 = vsyncpa [#allocation6], 0  ;;  %s655_s0 = inlined_call_operand.hbm [shape: f32[8,128], index: 0, kind: input, shape index: {}]   ;;  %s656_s1 = inlined_call_operand.hbm [shape: f32[8,8,128], index: 1, kind: input, shape index: {}]   ;;  %s657_s2 = inlined_call_operand.hbm [shape: f32[8,8,128], index: 2, kind: input, shape index: {}]   ;;  %s658_s3 = inlined_call_operand.hbm [shape: f32[8,128], index: 3, kind: output, shape index: {}]  }
   0x1   :  { %9 = vsyncpa [#allocation9], 0 }
   0x2   :  { %10 = vsyncpa [#allocation7], 0  ;;  %s542_s12 = smov [#allocation8]   ;;  %s448_s16 = scalar_lea.hbm %s656_s1, 1024 }
   0x3   :  { %s26_s13 = sshll.u32 %s542_s12, 4  ;;  %p449_p0 = scmp.ne.s32.totalorder %s656_s1, %s448_s16  ;;  %s27_s13 = int_to_ptr.vmem [resolvable:$true] %s26_s13 }
   0x4   :  { %p452_p1 = scmp.lt.u32.totalorder %s448_s16, %s656_s1 }
   0x6   :  { %p454_p2 = pnand %p452_p1, %p449_p0 }
   0x8   :  { %457 = shalt.err (!%p454_p2)
}
   0x9   :  { %s458_s21 = scalar_lea.vmem %s27_s13, 1024  ;;  %p463_p4 = scmp.lt.s32.totalorder %s27_s13, %s27_s13 }
   0xa   :  { %p459_p3 = scmp.ne.s32.totalorder %s27_s13, %s458_s21  ;;  %p464_p5 = scmp.lt.s32.totalorder %s458_s21, %s458_s21 }
   0xc   :  { %p465_p6 = por %p464_p5, %p463_p4 }
   0xe   :  { %p466_p7 = pnand %p465_p6, %p459_p3 }
  0x10   :  { %469 = shalt.err (!%p466_p7)
}
  0x11   :  { %s543_s22 = smov 128   ;;  %s544_s23 = smov 8  }
  0x12   :  { %32 = dma.hbm_to_vmem [thread:$0]  %s656_s1, 1024, %s27_s13, [#allocation9], %s543_s22, %s543_s22, %s544_s23  }
  0x13   :  { %s545_s26 = smov [#allocation5]   ;;  %s546_s28 = smov [#allocation10]  }
  0x14   :  { %s17_s27 = sshll.u32 %s545_s26, 4  ;;  %s38_s29 = sshll.u32 %s546_s28, 4  ;;  %s18_s27 = int_to_ptr.vmem [resolvable:$true] %s17_s27  ;;  %s39_s29 = int_to_ptr.vmem [resolvable:$true] %s38_s29 }
  0x15   :  { %s470_s5 = scalar_lea.hbm %s655_s0, 128 }
  0x16   :  { %p471_p8 = scmp.ne.s32.totalorder %s655_s0, %s470_s5  ;;  %p474_p9 = scmp.lt.u32.totalorder %s470_s5, %s655_s0 }
  0x18   :  { %p476_p10 = pnand %p474_p9, %p471_p8 }
  0x1a   :  { %479 = shalt.err (!%p476_p10)
}
  0x1b   :  { %s480_s1 = scalar_lea.vmem %s18_s27, 128  ;;  %p485_p12 = scmp.lt.s32.totalorder %s18_s27, %s18_s27 }
  0x1c   :  { %p481_p11 = scmp.ne.s32.totalorder %s18_s27, %s480_s1  ;;  %p486_p13 = scmp.lt.s32.totalorder %s480_s1, %s480_s1 }
  0x1e   :  { %p487_p0 = por %p486_p13, %p485_p12 }
  0x20   :  { %p488_p1 = pnand %p487_p0, %p481_p11 }
  0x22   :  { %491 = shalt.err (!%p488_p1)
}
  0x23   :  { %20 = dma.hbm_to_vmem [thread:$0]  %s655_s0, 128, %s18_s27, [#allocation6]  }
  0x24   :  { %s492_s14 = scalar_lea.hbm %s657_s2, 1024 }
  0x25   :  { %p493_p2 = scmp.ne.s32.totalorder %s657_s2, %s492_s14  ;;  %p496_p3 = scmp.lt.u32.totalorder %s492_s14, %s657_s2 }
  0x27   :  { %p498_p4 = pnand %p496_p3, %p493_p2 }
  0x29   :  { %501 = shalt.err (!%p498_p4)
}
  0x2a   :  { %s502_s19 = scalar_lea.vmem %s39_s29, 1024  ;;  %p507_p6 = scmp.lt.s32.totalorder %s39_s29, %s39_s29 }
  0x2b   :  { %p503_p5 = scmp.ne.s32.totalorder %s39_s29, %s502_s19  ;;  %p508_p7 = scmp.lt.s32.totalorder %s502_s19, %s502_s19 }
  0x2d   :  { %p509_p8 = por %p508_p7, %p507_p6 }
  0x2f   :  { %p510_p9 = pnand %p509_p8, %p503_p5 }
  0x31   :  { %513 = shalt.err (!%p510_p9)
}
  0x32   :  { %44 = dma.hbm_to_vmem [thread:$0]  %s657_s2, 1024, %s39_s29, [#allocation9], %s543_s22, %s543_s22, %s544_s23  }
  0x33   :  { %536 = dma.done.wait [#allocation6], 128  }
  0x34   :  { %537 = vsyncadd [#allocation6], 4294967168 }
  0x35   :  { %538 = dma.done.wait [#allocation9], 2048  }
  0x36   :  { %539 = vsyncadd [#allocation9], 4294965248  ;;  %v547_v0 = vmov 1065369472   ;;  %v63_v1 = vld [vmem:[#allocation5] sm:$0xff]  ;;  %v64_v2 = vld [vmem:[#allocation8] sm:$0xff] }
  0x37   :  { %365 = vmatprep.subr.bf16.mxu1 %v547_v0  ;;  %389 = vmatprep.subr.bf16.mxu0 %v547_v0  ;;  %v65_v3 = vld [vmem:[#allocation8 + $0x8] sm:$0xff]  ;;  %v80_v4 = vmul.f32 %v64_v2, %v63_v1  ;;  %v66_v7 = vld [vmem:[#allocation8 + $0x10] sm:$0xff]  ;;  %v67_v8 = vld [vmem:[#allocation8 + $0x18] sm:$0xff]  ;;  %s548_s2 = smov [#allocation11]  }
  0x38   :  { %366 = vmatpush3.bf16.msra.mxu1 %v547_v0  ;;  %390 = vmatpush3.bf16.msra.mxu0 %v547_v0  ;;  %v81_v5 = vmul.f32 %v65_v3, %v63_v1  ;;  %v68_v9 = vld [vmem:[#allocation8 + $0x20] sm:$0xff]  ;;  %v69_v10 = vld [vmem:[#allocation8 + $0x28] sm:$0xff]  ;;  %v82_v13 = vmul.f32 %v66_v7, %v63_v1  ;;  %v83_v14 = vmul.f32 %v67_v8, %v63_v1  ;;  %v70_v22 = vld [vmem:[#allocation8 + $0x30] sm:$0xff]  ;;  %s331_s21 = sshll.u32 %s548_s2, 4  ;;  %s332_s21 = int_to_ptr.vmem [resolvable:$true] %s331_s21 }
  0x39   :  { %367 = vmatprep.subr.bf16.mxu1 %v547_v0  ;;  %391 = vmatprep.subr.bf16.mxu0 %v547_v0  ;;  %v84_v15 = vmul.f32 %v68_v9, %v63_v1  ;;  %v85_v18 = vmul.f32 %v69_v10, %v63_v1  ;;  %v71_v23 = vld [vmem:[#allocation8 + $0x38] sm:$0xff]  ;;  %v86_v26 = vmul.f32 %v70_v22, %v63_v1  ;;  %s514_s22 = scalar_lea.vmem %s332_s21, 128  ;;  %p519_p11 = scmp.lt.s32.totalorder %s332_s21, %s332_s21 }
  0x3a   :  { %v88_v6 = vpack.c.bf16 %v81_v5, %v80_v4  ;;  %v89_v20 = vpack.c.bf16 %v83_v14, %v82_v13  ;;  %v87_v27 = vmul.f32 %v71_v23, %v63_v1  ;;  %p515_p10 = scmp.ne.s32.totalorder %s332_s21, %s514_s22  ;;  %p520_p12 = scmp.lt.s32.totalorder %s514_s22, %s514_s22 }
  0x3b   :  { %v90_v21 = vpack.c.bf16 %v85_v18, %v84_v15 }
  0x3c   :  { %368 = vmatpush3.bf16.msra.mxu1 %v547_v0  ;;  %392 = vmatpush3.bf16.msra.mxu0 %v547_v0  ;;  %v92_v11 = vunpack.c.l.bf16 %v88_v6  ;;  %v93_v12 = vunpack.c.h.bf16 %v88_v6  ;;  %v94_v24 = vunpack.c.l.bf16 %v89_v20  ;;  %v95_v25 = vunpack.c.h.bf16 %v89_v20  ;;  %p521_p13 = por %p520_p12, %p519_p11 }
  0x3d   :  { %369 = vmatprep.subr.bf16.mxu1 %v547_v0  ;;  %393 = vmatprep.subr.bf16.mxu0 %v547_v0  ;;  %v96_v28 = vunpack.c.l.bf16 %v90_v21  ;;  %v97_v29 = vunpack.c.h.bf16 %v90_v21  ;;  %v91_v32 = vpack.c.bf16 %v87_v27, %v86_v26 }
  0x3e   :  { %405 = vmatprep.mubr.bf16.mxu0 %v88_v6  ;;  %v100_v16 = vsub.f32 %v80_v4, %v92_v11  ;;  %v101_v17 = vsub.f32 %v81_v5, %v93_v12  ;;  %v102_v30 = vsub.f32 %v82_v13, %v94_v24  ;;  %v103_v31 = vsub.f32 %v83_v14, %v95_v25  ;;  %p522_p0 = pnand %p521_p13, %p515_p10 }
  0x3f   :  { %v104_v33 = vsub.f32 %v84_v15, %v96_v28  ;;  %v105_v34 = vsub.f32 %v85_v18, %v97_v29  ;;  %v98_v36 = vunpack.c.l.bf16 %v91_v32  ;;  %v99_v37 = vunpack.c.h.bf16 %v91_v32 }
  0x40   :  { %370 = vmatpush3.bf16.msra.mxu1 %v547_v0  ;;  %394 = vmatpush3.bf16.msra.mxu0 %v547_v0  ;;  %v108_v19 = vpack.c.bf16 %v101_v17, %v100_v16  ;;  %v109_v35 = vpack.c.bf16 %v103_v31, %v102_v30 }
  0x41   :  { %371 = vmatprep.subr.bf16.mxu1 %v547_v0  ;;  %395 = vmatprep.subr.bf16.mxu0 %v547_v0  ;;  %v110_v38 = vpack.c.bf16 %v105_v34, %v104_v33  ;;  %v106_v39 = vsub.f32 %v86_v26, %v98_v36  ;;  %v107_v40 = vsub.f32 %v87_v27, %v99_v37  ;;  %v73_v36 = vld [vmem:[#allocation10 + $0x8] sm:$0xff] }
  0x42   :  { %381 = vmatprep.mubr.bf16.mxu1 %v108_v19 }
  0x43   :  { %v111_v41 = vpack.c.bf16 %v107_v40, %v106_v39  ;;  %v74_v39 = vld [vmem:[#allocation10 + $0x10] sm:$0xff] }
  0x44   :  { %372 = vmatpush3.bf16.msra.mxu1 %v547_v0  ;;  %396 = vmatpush3.bf16.msra.mxu0 %v547_v0 }
  0x45   :  { %373 = vmatprep.subr.bf16.mxu1 %v547_v0  ;;  %397 = vmatprep.subr.bf16.mxu0 %v547_v0 }
  0x48   :  { %374 = vmatpush3.bf16.msra.mxu1 %v547_v0  ;;  %398 = vmatpush3.bf16.msra.mxu0 %v547_v0 }
  0x49   :  { %375 = vmatprep.subr.bf16.mxu1 %v547_v0  ;;  %399 = vmatprep.subr.bf16.mxu0 %v547_v0 }
  0x4c   :  { %376 = vmatpush3.bf16.msra.mxu1 %v547_v0  ;;  %400 = vmatpush3.bf16.msra.mxu0 %v547_v0 }
  0x4d   :  { %377 = vmatprep.subr.bf16.mxu1 %v547_v0  ;;  %401 = vmatprep.subr.bf16.mxu0 %v547_v0 }
  0x50   :  { %378 = vmatpush3.bf16.msra.mxu1 %v547_v0  ;;  %402 = vmatpush3.bf16.msra.mxu0 %v547_v0 }
  0x51   :  { %379 = vmatprep.subr.bf16.mxu1 %v547_v0  ;;  %403 = vmatprep.subr.bf16.mxu0 %v547_v0 }
  0x54   :  { %380 = vmatpush3.bf16.msra.mxu1 %v547_v0  ;;  %404 = vmatpush3.bf16.msra.mxu0 %v547_v0 }
  0x57   :  { %382 = vmatmul.mubr.bf16.vlgmr.msra.gmra.mrb[0].mxu1 %v109_v35  ;;  %406 = vmatmul.mubr.bf16.vlgmr.msra.gmra.mrb[0].mxu0 %v89_v20  ;;  %v72_v35 = vld [vmem:[#allocation10] sm:$0xff] }
  0x58   :  { %385 = vmatprep.mubr.bf16.mxu1 %v110_v38  ;;  %409 = vmatprep.mubr.bf16.mxu0 %v90_v21 }
  0x5f   :  { %386 = vmatmul.mubr.bf16.gmra.mrb[4].mxu1 %v111_v41  ;;  %410 = vmatmul.mubr.bf16.gmra.mrb[4].mxu0 %v91_v32 }
 0x12a   :  { %v383_v42 = vpop.f32.mrb[0].mxu1  ;;  %v407_v43 = vpop.f32.mrb[0].mxu0 }
 0x12b   :  { %v220_v44 = vadd.f32 %v407_v43, %v383_v42  ;;  %v146_v45 = vpop.f32.mrb[1].mxu1  ;;  %v211_v46 = vpop.f32.mrb[1].mxu0 }
 0x12c   :  { %v212_v47 = vadd.f32 %v211_v46, %v146_v45  ;;  %v384_v48 = vpop.f32.mrb[2].mxu1  ;;  %v408_v49 = vpop.f32.mrb[2].mxu0  ;;  %v75_v45 = vld [vmem:[#allocation10 + $0x18] sm:$0xff] }
 0x12d   :  { %v223_v50 = vadd.f32 %v408_v49, %v384_v48  ;;  %v149_v51 = vpop.f32.mrb[3].mxu1  ;;  %v214_v52 = vpop.f32.mrb[3].mxu0  ;;  %v244_v62 = vmul.f32 0.17677669, %v220_v44 }
 0x12e   :  { %v215_v53 = vadd.f32 %v214_v52, %v149_v51  ;;  %v242_v3 = vmul.f32 0.17677669, %v212_v47 }
 0x12f   :  { %v245_v6 = vmul.f32 0.17677669, %v223_v50  ;;  %v76_v50 = vld [vmem:[#allocation10 + $0x20] sm:$0xff] }
 0x130   :  { %v243_v9 = vmul.f32 0.17677669, %v215_v53 }
 0x132   :  { %v387_v54 = vpop.f32.mrb[4].mxu1  ;;  %v411_v55 = vpop.f32.mrb[4].mxu0 }
 0x133   :  { %v236_v56 = vadd.f32 %v411_v55, %v387_v54  ;;  %v162_v57 = vpop.f32.mrb[5].mxu1  ;;  %v227_v58 = vpop.f32.mrb[5].mxu0  ;;  %v77_v55 = vld [vmem:[#allocation10 + $0x28] sm:$0xff] }
 0x134   :  { %v228_v59 = vadd.f32 %v227_v58, %v162_v57  ;;  %v388_v60 = vpop.f32.mrb[6].mxu1  ;;  %v412_v61 = vpop.f32.mrb[6].mxu0 }
 0x135   :  { %v248_v63 = vmul.f32 0.17677669, %v236_v56  ;;  %v239_v0 = vadd.f32 %v412_v61, %v388_v60  ;;  %v165_v1 = vpop.f32.mrb[7].mxu1  ;;  %v230_v2 = vpop.f32.mrb[7].mxu0  ;;  %v78_v60 = vld [vmem:[#allocation10 + $0x30] sm:$0xff] }
 0x136   :  { %v246_v4 = vmul.f32 0.17677669, %v228_v59  ;;  %v231_v5 = vadd.f32 %v230_v2, %v165_v1  ;;  %v79_v2 = vld [vmem:[#allocation10 + $0x38] sm:$0xff] }
 0x137   :  { %v253_v7 = vmax.f32 %v244_v62, %v248_v63  ;;  %v249_v8 = vmul.f32 0.17677669, %v239_v0 }
 0x138   :  { %v251_v10 = vmax.f32 %v242_v3, %v246_v4  ;;  %v247_v11 = vmul.f32 0.17677669, %v231_v5 }
 0x139   :  { %v254_v12 = vmax.f32 %v245_v6, %v249_v8 }
 0x13a   :  { %v252_v13 = vmax.f32 %v243_v9, %v247_v11 }
 0x13b   :  { %v256_v14 = vmax.f32 %v253_v7, %v254_v12 }
 0x13c   :  { %v255_v15 = vmax.f32 %v251_v10, %v252_v13 }
 0x13e   :  { %v257_v16 = vmax.f32 %v255_v15, %v256_v14 }
 0x140   :  { %v262_v17 = vsub.f32 %v242_v3, %v257_v16  ;;  %v263_v18 = vsub.f32 %v243_v9, %v257_v16  ;;  %v264_v19 = vsub.f32 %v244_v62, %v257_v16  ;;  %v265_v20 = vsub.f32 %v245_v6, %v257_v16 }
 0x141   :  { %v266_v21 = vsub.f32 %v246_v4, %v257_v16  ;;  %v267_v22 = vsub.f32 %v247_v11, %v257_v16  ;;  %v268_v23 = vsub.f32 %v248_v63, %v257_v16  ;;  %v269_v27 = vsub.f32 %v249_v8, %v257_v16 }
 0x142   :  { %v270_v24 = vmul.f32 1.442695, %v262_v17  ;;  %v272_v25 = vmul.f32 1.442695, %v263_v18  ;;  %v274_v26 = vmul.f32 1.442695, %v264_v19 }
 0x143   :  { %v276_v28 = vmul.f32 1.442695, %v265_v20  ;;  %v278_v29 = vmul.f32 1.442695, %v266_v21  ;;  %v259_v30 = vsub.f32 -inf, %v257_v16 }
 0x144   :  { %428 = vpow2.f32 %v270_v24  ;;  %v280_v31 = vmul.f32 1.442695, %v267_v22  ;;  %v282_v32 = vmul.f32 1.442695, %v268_v23  ;;  %v284_v34 = vmul.f32 1.442695, %v269_v27 }
 0x145   :  { %430 = vpow2.f32 %v272_v25  ;;  %v260_v33 = vmul.f32 1.442695, %v259_v30 }
 0x146   :  { %432 = vpow2.f32 %v274_v26 }
 0x147   :  { %434 = vpow2.f32 %v276_v28 }
 0x148   :  { %436 = vpow2.f32 %v278_v29 }
 0x149   :  { %438 = vpow2.f32 %v280_v31 }
 0x14a   :  { %440 = vpow2.f32 %v282_v32 }
 0x14b   :  { %442 = vpow2.f32 %v260_v33 }
 0x14c   :  { %444 = vpow2.f32 %v284_v34 }
 0x14e   :  { %v429_v37 = vpop.eup %428 }
 0x14f   :  { %v431_v38 = vpop.eup %430  ;;  %v300_v40 = vmul.f32 %v429_v37, %v72_v35 }
 0x150   :  { %v433_v41 = vpop.eup %432  ;;  %v288_v42 = vadd.f32 %v431_v38, %v429_v37  ;;  %v301_v43 = vmul.f32 %v431_v38, %v73_v36 }
 0x151   :  { %v435_v44 = vpop.eup %434  ;;  %v302_v47 = vmul.f32 %v433_v41, %v74_v39 }
 0x152   :  { %v289_v46 = vadd.f32 %v433_v41, %v288_v42  ;;  %v308_v48 = vadd.f32 %v301_v43, %v300_v40  ;;  %v437_v49 = vpop.eup %436  ;;  %v303_v52 = vmul.f32 %v435_v44, %v75_v45 }
 0x153   :  { %v439_v54 = vpop.eup %438  ;;  %v304_v57 = vmul.f32 %v437_v49, %v76_v50 }
 0x154   :  { %v290_v51 = vadd.f32 %v435_v44, %v289_v46  ;;  %v309_v53 = vadd.f32 %v308_v48, %v302_v47  ;;  %v441_v59 = vpop.eup %440  ;;  %v305_v63 = vmul.f32 %v439_v54, %v77_v55 }
 0x155   :  { %v443_v61 = vpop.eup %442  ;;  %v306_v4 = vmul.f32 %v441_v59, %v78_v60 }
 0x156   :  { %v291_v56 = vadd.f32 %v437_v49, %v290_v51  ;;  %v310_v58 = vadd.f32 %v309_v53, %v303_v52  ;;  %v445_v1 = vpop.eup %444  ;;  %v287_v6 = vmul.f32 0.0, %v443_v61 }
 0x157   :  { %v307_v8 = vmul.f32 %v445_v1, %v79_v2 }
 0x158   :  { %v292_v62 = vadd.f32 %v439_v54, %v291_v56  ;;  %v311_v0 = vadd.f32 %v310_v58, %v304_v57 }
 0x15a   :  { %v293_v3 = vadd.f32 %v441_v59, %v292_v62  ;;  %v312_v5 = vadd.f32 %v311_v0, %v305_v63 }
 0x15c   :  { %v294_v7 = vadd.f32 %v445_v1, %v293_v3  ;;  %v313_v9 = vadd.f32 %v312_v5, %v306_v4 }
 0x15e   :  { %v295_v10 = vadd.f32 %v294_v7, %v287_v6  ;;  %v314_v11 = vadd.f32 %v313_v9, %v307_v8 }
 0x160   :  { %v315_v12 = vadd.f32 %v314_v11, %v287_v6  ;;  %446 = vrcp.f32 %v295_v10 }
 0x16a   :  { %v447_v13 = vpop.eup %446 }
 0x16b   :  { %v323_v14 = vmul.f32 %v447_v13, %v315_v12 }
 0x16d   :  { %324 = vst [vmem:[#allocation11] sm:$0xff] %v323_v14 }
 0x16e   :  { %525 = shalt.err (!%p522_p0)
}
 0x16f   :  { %s526_s25 = scalar_lea.hbm %s658_s3, 128 }
 0x170   :  { %p527_p1 = scmp.ne.s32.totalorder %s658_s3, %s526_s25  ;;  %p530_p2 = scmp.lt.u32.totalorder %s526_s25, %s658_s3 }
 0x172   :  { %p532_p3 = pnand %p530_p2, %p527_p1 }
 0x174   :  { %535 = shalt.err (!%p532_p3)
}
 0x175   :  { %334 = dma.vmem_to_hbm [thread:$0]  %s332_s21, 128, %s658_s3, [#allocation7]  }
 0x176   :  { %540 = dma.done.wait [#allocation7], 128  }
 0x177   :  { %541 = vsyncadd [#allocation7], 4294967168 }
 0x178   :  { %338 = vsyncpa [#allocation6], 1 }
 0x179   :  { %339 = vsyncpa [#allocation9], 1 }
 0x17a   :  { %340 = vsyncpa [#allocation7], 1 }

</bundles_post_ra>
